<compile_context>
chip_gen: v7x
topology: tpu7x:2x2x1
jax: 0.10.0
libtpu: 0.0.40
codegen_flags: <defaults>
</compile_context>

<pallas_src>
import functools
import math

import jax
import jax.numpy as jnp
from jax.experimental import pallas as pl
from jax.experimental.pallas import tpu as pltpu

LN_EPS = 1e-5  # nn.LayerNorm default


def _layernorm(x, gamma, beta):
    mean = jnp.mean(x, axis=-1, keepdims=True)
    var = jnp.mean((x - mean) ** 2, axis=-1, keepdims=True)
    return (x - mean) * jax.lax.rsqrt(var + LN_EPS) * gamma + beta


def _gelu_tanh(x):
    # exactly the GELU module in the reference
    return 0.5 * x * (1.0 + jnp.tanh(math.sqrt(2.0 / math.pi) * (x + 0.044715 * x * x * x)))


# ----------------------------- Pallas kernel ------------------------------

def layer_kernel(x_ref, ln1g_ref, ln1b_ref, wqkv_ref, wout_ref, bout_ref,
                 ln2g_ref, ln2b_ref, w1_ref, b1_ref, w2_ref, b2_ref,
                 o_ref, *, heads, dim_head):
    """One fused transformer layer for one batch element:
         x -> x + Attn(LN1(x)) -> that + FF(LN2(that))   (dropout p=0 -> identity)."""
    # TODO(synk): attention-mask path (mask is not None) not implemented; forward uses mask=None.
    # TODO(synk): for long sequences, replace the full (H, N, N) score tile with a KV-tiled
    #             online-softmax (flash-style) accumulator.
    _, N, D = x_ref.shape
    dh = dim_head
    scale = float(dim_head) ** -0.5
    bf16 = jnp.bfloat16

    x = x_ref[0]                                                  # (N, D) f32

    # ---------------- Residual(PreNorm(Attention)) ----------------
    xn = _layernorm(x, ln1g_ref[...], ln1b_ref[...])              # (N, D) f32
    xh = jnp.broadcast_to(xn.astype(bf16)[None], (heads, N, D))   # (H, N, D) bf16

    # Batched per-head QKV projection: ONE dot_general over the head batch dim.
    qkv = jnp.einsum('hnd,hde->hne', xh, wqkv_ref[...].astype(bf16),
                     preferred_element_type=jnp.float32)          # (H, N, 3*dh) f32
    q = qkv[:, :, 0 * dh:1 * dh]
    k = qkv[:, :, 1 * dh:2 * dh]
    v = qkv[:, :, 2 * dh:3 * dh]

    # Batched scores / softmax / context for all heads at once.
    dots = jnp.einsum('hid,hjd->hij', q.astype(bf16), k.astype(bf16),
                      preferred_element_type=jnp.float32) * scale  # (H, N, N) f32
    dots = dots - jnp.max(dots, axis=-1, keepdims=True)
    e = jnp.exp(dots)
    attn = e * pl.reciprocal(jnp.sum(e, axis=-1, keepdims=True), approx=True)

    o_h = jnp.einsum('hij,hjd->hid', attn.astype(bf16), v.astype(bf16),
                     preferred_element_type=jnp.float32)           # (H, N, dh) f32

    # Per-head output projection (still one batched dot_general), then merge heads by
    # summing the per-head contributions (cheap VPU adds only -- no concat, no small matmuls).
    y_h = jnp.einsum('hnd,hdk->hnk', o_h.astype(bf16), wout_ref[...].astype(bf16),
                     preferred_element_type=jnp.float32)           # (H, N, D) f32
    y = y_h[0]
    for h in range(1, heads):
        y = y + y_h[h]

    x = x + y + bout_ref[...]                                      # residual + out-proj bias

    # ---------------- Residual(PreNorm(FeedForward)) ----------------
    xn2 = _layernorm(x, ln2g_ref[...], ln2b_ref[...])
    h1 = jnp.dot(xn2.astype(bf16), w1_ref[...].astype(bf16),
                 preferred_element_type=jnp.float32) + b1_ref[...]
    h1 = _gelu_tanh(h1)
    y2 = jnp.dot(h1.astype(bf16), w2_ref[...].astype(bf16),
                 preferred_element_type=jnp.float32) + b2_ref[...]

    o_ref[0] = (x + y2).astype(o_ref.dtype)                        # residual


# ------------------------------ wrapper -----------------------------------

def transformer_layer(x, p, *, heads, dim_head):
    B, N, D = x.shape
    inner = heads * dim_head
    mlp_dim = p['w1'].shape[1]

    kernel = functools.partial(layer_kernel, heads=heads, dim_head=dim_head)

    row_map = lambda b: (b, 0, 0)      # activation tiles walk the batch axis
    full2 = lambda b: (0, 0)           # weights: same (whole-array) block every step
    full3 = lambda b: (0, 0, 0)

    in_specs = [
        pl.BlockSpec((1, N, D), row_map),                 # x
        pl.BlockSpec((1, D), full2),                      # ln1 gamma
        pl.BlockSpec((1, D), full2),                      # ln1 beta
        pl.BlockSpec((heads, D, 3 * dim_head), full3),    # per-head qkv weight
        pl.BlockSpec((heads, dim_head, D), full3),        # per-head out-proj weight
        pl.BlockSpec((1, D), full2),                      # out-proj bias
        pl.BlockSpec((1, D), full2),                      # ln2 gamma
        pl.BlockSpec((1, D), full2),                      # ln2 beta
        pl.BlockSpec((D, mlp_dim), full2),                # w1
        pl.BlockSpec((1, mlp_dim), full2),                # b1
        pl.BlockSpec((mlp_dim, D), full2),                # w2
        pl.BlockSpec((1, D), full2),                      # b2
    ]
    out_specs = pl.BlockSpec((1, N, D), row_map)

    # advisory cost estimate so XLA can schedule around the call
    flops = (2 * B * N * D * 3 * inner                  # qkv projection
             + 2 * B * heads * N * N * dim_head * 2     # scores + attn @ v
             + 2 * B * N * inner * D                    # output projection
             + 2 * B * N * D * mlp_dim * 2)             # feed-forward
    transcendentals = B * heads * N * N + B * N * mlp_dim
    weight_bytes = 4 * (4 * D + D * 3 * inner + inner * D + 2 * D
                        + D * mlp_dim + mlp_dim + mlp_dim * D)
    bytes_accessed = 4 * 2 * B * N * D + weight_bytes

    return pl.pallas_call(
        kernel,
        out_shape=jax.ShapeDtypeStruct(x.shape, x.dtype),
        grid=(B,),
        in_specs=in_specs,
        out_specs=out_specs,
        compiler_params=pltpu.CompilerParams(
            dimension_semantics=("parallel",),          # megacore-shard the batch on v7x
            vmem_limit_bytes=32 * 1024 * 1024),         # fits v7x's 64 MiB VMEM with margin
        cost_estimate=pl.CostEstimate(flops=flops,
                                      transcendentals=transcendentals,
                                      bytes_accessed=bytes_accessed),
    )(x, p['ln1_g'], p['ln1_b'], p['w_qkv_h'], p['w_out_h'], p['b_out'],
      p['ln2_g'], p['ln2_b'], p['w1'], p['b1'], p['w2'], p['b2'])


def prepare_params(params, *, heads, dim_head):
    """Host-side re-layout of the PyTorch-style weights into per-head tensors (done once)."""
    prepared = []
    for layer in params:
        pa, pf = layer['attn'], layer['ff']
        dim = pa['w_qkv'].shape[0]
        wq, wk, wv = jnp.split(pa['w_qkv'], 3, axis=1)   # (dim, inner), columns head-major (h d)

        def per_head(w):
            return w.reshape(dim, heads, dim_head).transpose(1, 0, 2)   # (H, dim, dh)

        w_qkv_h = jnp.concatenate([per_head(wq), per_head(wk), per_head(wv)], axis=-1)
        w_out_h = pa['w_out'].reshape(heads, dim_head, dim)             # (H, dh, dim)
        prepared.append(dict(
            ln1_g=pa['ln_g'], ln1_b=pa['ln_b'],
            w_qkv_h=w_qkv_h, w_out_h=w_out_h, b_out=pa['b_out'],
            ln2_g=pf['ln_g'], ln2_b=pf['ln_b'],
            w1=pf['w1'], b1=pf['b1'], w2=pf['w2'], b2=pf['b2']))
    return prepared


def transformer_forward(x, params, *, heads, dim_head):
    prepared = prepare_params(params, heads=heads, dim_head=dim_head)
    for p in prepared:
        x = transformer_layer(x, p, heads=heads, dim_head=dim_head)
    return x


# --------------------------- parameter init --------------------------------

def init_params(key, *, dim, depth, heads, dim_head, mlp_dim):
    """Deterministic init mimicking PyTorch Linear/LayerNorm defaults."""
    inner = heads * dim_head
    layers = []
    for _ in range(depth):
        key, k1, k2, k3, k4, k5, k6, k7 = jax.random.split(key, 8)
        bq = 1.0 / math.sqrt(dim)
        bo = 1.0 / math.sqrt(inner)
        b1b = 1.0 / math.sqrt(dim)
        b2b = 1.0 / math.sqrt(mlp_dim)
        attn = dict(
            ln_g=jnp.ones((1, dim), jnp.float32),
            ln_b=jnp.zeros((1, dim), jnp.float32),
            w_qkv=jax.random.uniform(k1, (dim, 3 * inner), jnp.float32, -bq, bq),
            w_out=jax.random.uniform(k2, (inner, dim), jnp.float32, -bo, bo),
            b_out=jax.random.uniform(k3, (1, dim), jnp.float32, -bo, bo),
        )
        ff = dict(
            ln_g=jnp.ones((1, dim), jnp.float32),
            ln_b=jnp.zeros((1, dim), jnp.float32),
            w1=jax.random.uniform(k4, (dim, mlp_dim), jnp.float32, -b1b, b1b),
            b1=jax.random.uniform(k5, (1, mlp_dim), jnp.float32, -b1b, b1b),
            w2=jax.random.uniform(k6, (mlp_dim, dim), jnp.float32, -b2b, b2b),
            b2=jax.random.uniform(k7, (1, dim), jnp.float32, -b2b, b2b),
        )
        layers.append(dict(attn=attn, ff=ff))
    return layers


# --------------------------- pure-JAX reference -----------------------------

def reference_forward(x, params, *, heads, dim_head):
    """Faithful f32 re-implementation of the PyTorch Transformer (mask=None path)."""
    inner = heads * dim_head
    scale = dim_head ** -0.5
    B, N, D = x.shape
    for layer in params:
        p = layer['attn']
        xn = _layernorm(x, p['ln_g'], p['ln_b'])
        qkv = xn @ p['w_qkv']
        q, k, v = jnp.split(qkv, 3, axis=-1)

        def to_heads(t):
            return t.reshape(B, N, heads, dim_head).transpose(0, 2, 1, 3)

        q, k, v = map(to_heads, (q, k, v))
        dots = jnp.einsum('bhid,bhjd->bhij', q, k) * scale
        attn = jax.nn.softmax(dots, axis=-1)
        out = jnp.einsum('bhij,bhjd->bhid', attn, v)
        out = out.transpose(0, 2, 1, 3).reshape(B, N, inner)
        x = x + (out @ p['w_out'] + p['b_out'])

        p = layer['ff']
        xn = _layernorm(x, p['ln_g'], p['ln_b'])
        h = _gelu_tanh(xn @ p['w1'] + p['b1'])
        x = x + (h @ p['w2'] + p['b2'])
    return x


# --------------------------------- main -------------------------------------

if __name__ == "__main__":
    B, N = 2, 8
    dim, depth, heads, dim_head, mlp_dim = 32, 2, 4, 8, 64

    key = jax.random.PRNGKey(0)
    kx, kp = jax.random.split(key)
    x = jax.random.normal(kx, (B, N, dim), jnp.float32)
    params = init_params(kp, dim=dim, depth=depth, heads=heads,
                         dim_head=dim_head, mlp_dim=mlp_dim)

    out = transformer_forward(x, params, heads=heads, dim_head=dim_head)
    out = jax.block_until_ready(out)

    ref = reference_forward(x, params, heads=heads, dim_head=dim_head)
    assert out.shape == (B, N, dim)
    # bf16 MXU operands (f32 accumulation) + approx softmax reciprocal -> compare with a
    # tolerance appropriate for mixed precision against the exact-f32 reference.
    assert jnp.allclose(out, ref, atol=2e-2, rtol=2e-2), "mismatch vs pure-JAX reference"

    print("KERNEL_OK")
</pallas_src>

<mosaic_0001>
module attributes {stable_mosaic.version = 11 : i64} {
  func.func @layer_kernel(%arg0: i32, %arg1: memref<1x8x32xf32, #tpu.memory_space<vmem>>, %arg2: memref<1x32xf32, #tpu.memory_space<vmem>>, %arg3: memref<1x32xf32, #tpu.memory_space<vmem>>, %arg4: memref<4x32x24xf32, #tpu.memory_space<vmem>>, %arg5: memref<4x8x32xf32, #tpu.memory_space<vmem>>, %arg6: memref<1x32xf32, #tpu.memory_space<vmem>>, %arg7: memref<1x32xf32, #tpu.memory_space<vmem>>, %arg8: memref<1x32xf32, #tpu.memory_space<vmem>>, %arg9: memref<32x64xf32, #tpu.memory_space<vmem>>, %arg10: memref<1x64xf32, #tpu.memory_space<vmem>>, %arg11: memref<64x32xf32, #tpu.memory_space<vmem>>, %arg12: memref<1x32xf32, #tpu.memory_space<vmem>>, %arg13: memref<1x8x32xf32, #tpu.memory_space<vmem>>) attributes {dimension_semantics = [#tpu.dimension_semantics<parallel>], iteration_bounds = array<i64: 2>, scalar_prefetch = 0 : i64, scratch_operands = 0 : i64, tpu.core_type = #tpu.core_type<tc>, window_params = [{transform_indices = @transform_0, window_bounds = array<i64: 1, 8, 32>}, {pipeline_mode = #tpu.pipeline_mode<synchronous>, transform_indices = @transform_1, window_bounds = array<i64: 1, 32>}, {pipeline_mode = #tpu.pipeline_mode<synchronous>, transform_indices = @transform_2, window_bounds = array<i64: 1, 32>}, {pipeline_mode = #tpu.pipeline_mode<synchronous>, transform_indices = @transform_3, window_bounds = array<i64: 4, 32, 24>}, {pipeline_mode = #tpu.pipeline_mode<synchronous>, transform_indices = @transform_4, window_bounds = array<i64: 4, 8, 32>}, {pipeline_mode = #tpu.pipeline_mode<synchronous>, transform_indices = @transform_5, window_bounds = array<i64: 1, 32>}, {pipeline_mode = #tpu.pipeline_mode<synchronous>, transform_indices = @transform_6, window_bounds = array<i64: 1, 32>}, {pipeline_mode = #tpu.pipeline_mode<synchronous>, transform_indices = @transform_7, window_bounds = array<i64: 1, 32>}, {pipeline_mode = #tpu.pipeline_mode<synchronous>, transform_indices = @transform_8, window_bounds = array<i64: 32, 64>}, {pipeline_mode = #tpu.pipeline_mode<synchronous>, transform_indices = @transform_9, window_bounds = array<i64: 1, 64>}, {pipeline_mode = #tpu.pipeline_mode<synchronous>, transform_indices = @transform_10, window_bounds = array<i64: 64, 32>}, {pipeline_mode = #tpu.pipeline_mode<synchronous>, transform_indices = @transform_11, window_bounds = array<i64: 1, 32>}, {transform_indices = @transform_12, window_bounds = array<i64: 1, 8, 32>}]} {
    %c0 = arith.constant 0 : index
    %c0_0 = arith.constant 0 : index
    %c0_1 = arith.constant 0 : index
    %0 = vector.load %arg1[%c0, %c0_0, %c0_1] : memref<1x8x32xf32, #tpu.memory_space<vmem>>, vector<1x8x32xf32>
    %1 = vector.shape_cast %0 : vector<1x8x32xf32> to vector<8x32xf32>
    %c0_2 = arith.constant 0 : index
    %c0_3 = arith.constant 0 : index
    %2 = vector.load %arg2[%c0_2, %c0_3] : memref<1x32xf32, #tpu.memory_space<vmem>>, vector<1x32xf32>
    %c0_4 = arith.constant 0 : index
    %c0_5 = arith.constant 0 : index
    %3 = vector.load %arg3[%c0_4, %c0_5] : memref<1x32xf32, #tpu.memory_space<vmem>>, vector<1x32xf32>
    %cst = arith.constant dense<0.000000e+00> : vector<8xf32>
    %4 = vector.multi_reduction <add>, %1, %cst [1] : vector<8x32xf32> to vector<8xf32>
    %5 = vector.shape_cast %4 : vector<8xf32> to vector<8x1xf32>
    %cst_6 = arith.constant 3.200000e+01 : f32
    %6 = vector.broadcast %cst_6 : f32 to vector<8x1xf32>
    %7 = arith.divf %5, %6 : vector<8x1xf32>
    %8 = vector.broadcast %7 : vector<8x1xf32> to vector<8x32xf32>
    %9 = arith.subf %1, %8 : vector<8x32xf32>
    %10 = arith.mulf %9, %9 : vector<8x32xf32>
    %cst_7 = arith.constant dense<0.000000e+00> : vector<8xf32>
    %11 = vector.multi_reduction <add>, %10, %cst_7 [1] : vector<8x32xf32> to vector<8xf32>
    %12 = vector.shape_cast %11 : vector<8xf32> to vector<8x1xf32>
    %cst_8 = arith.constant 3.200000e+01 : f32
    %13 = vector.broadcast %cst_8 : f32 to vector<8x1xf32>
    %14 = arith.divf %12, %13 : vector<8x1xf32>
    %15 = vector.broadcast %7 : vector<8x1xf32> to vector<8x32xf32>
    %16 = arith.subf %1, %15 : vector<8x32xf32>
    %cst_9 = arith.constant 9.99999974E-6 : f32
    %17 = vector.broadcast %cst_9 : f32 to vector<8x1xf32>
    %18 = arith.addf %14, %17 : vector<8x1xf32>
    %19 = math.rsqrt %18 : vector<8x1xf32>
    %20 = vector.broadcast %19 : vector<8x1xf32> to vector<8x32xf32>
    %21 = arith.mulf %16, %20 : vector<8x32xf32>
    %22 = vector.broadcast %2 : vector<1x32xf32> to vector<8x32xf32>
    %23 = arith.mulf %21, %22 : vector<8x32xf32>
    %24 = vector.broadcast %3 : vector<1x32xf32> to vector<8x32xf32>
    %25 = arith.addf %23, %24 : vector<8x32xf32>
    %26 = arith.truncf %25 : vector<8x32xf32> to vector<8x32xbf16>
    %27 = vector.shape_cast %26 : vector<8x32xbf16> to vector<1x8x32xbf16>
    %28 = vector.shape_cast %27 : vector<1x8x32xbf16> to vector<1x8x32xbf16>
    %29 = vector.broadcast %28 : vector<1x8x32xbf16> to vector<4x8x32xbf16>
    %c0_10 = arith.constant 0 : index
    %c0_11 = arith.constant 0 : index
    %c0_12 = arith.constant 0 : index
    %30 = vector.load %arg4[%c0_10, %c0_11, %c0_12] : memref<4x32x24xf32, #tpu.memory_space<vmem>>, vector<4x32x24xf32>
    %31 = arith.truncf %30 : vector<4x32x24xf32> to vector<4x32x24xbf16>
    "tpu.trace_start"() <{level = 10 : i32, message = "hnd,hde->hne"}> : () -> ()
    %cst_13 = arith.constant dense<0.000000e+00> : vector<4x8x24xf32>
    %32 = tpu.matmul %29, %31, %cst_13 {dimension_numbers = #tpu.dot_dimension_numbers<[2], [1], [1], [2], [0, 0, 0, 1, 1, 2], [0], [0]>} : vector<4x8x32xbf16>, vector<4x32x24xbf16>, vector<4x8x24xf32> -> vector<4x8x24xf32>
    "tpu.trace_stop"() : () -> ()
    %33 = vector.extract_strided_slice %32 {offsets = [0, 0, 0], sizes = [4, 8, 8], strides = [1, 1, 1]} : vector<4x8x24xf32> to vector<4x8x8xf32>
    %34 = vector.extract_strided_slice %32 {offsets = [0, 0, 8], sizes = [4, 8, 8], strides = [1, 1, 1]} : vector<4x8x24xf32> to vector<4x8x8xf32>
    %35 = vector.extract_strided_slice %32 {offsets = [0, 0, 16], sizes = [4, 8, 8], strides = [1, 1, 1]} : vector<4x8x24xf32> to vector<4x8x8xf32>
    %36 = arith.truncf %33 : vector<4x8x8xf32> to vector<4x8x8xbf16>
    %37 = arith.truncf %34 : vector<4x8x8xf32> to vector<4x8x8xbf16>
    "tpu.trace_start"() <{level = 10 : i32, message = "hid,hjd->hij"}> : () -> ()
    %cst_14 = arith.constant dense<0.000000e+00> : vector<4x8x8xf32>
    %38 = tpu.matmul %36, %37, %cst_14 {dimension_numbers = #tpu.dot_dimension_numbers<[2], [2], [1], [1], [0, 0, 0, 1, 1, 1], [0], [0]>} : vector<4x8x8xbf16>, vector<4x8x8xbf16>, vector<4x8x8xf32> -> vector<4x8x8xf32>
    "tpu.trace_stop"() : () -> ()
    %cst_15 = arith.constant 0.353553385 : f32
    %39 = vector.broadcast %cst_15 : f32 to vector<4x8x8xf32>
    %40 = arith.mulf %38, %39 : vector<4x8x8xf32>
    %cst_16 = arith.constant dense<0xFF800000> : vector<4x8xf32>
    %41 = vector.multi_reduction <maximumf>, %40, %cst_16 [2] : vector<4x8x8xf32> to vector<4x8xf32>
    %42 = vector.shape_cast %41 : vector<4x8xf32> to vector<4x8x1xf32>
    %43 = vector.broadcast %42 : vector<4x8x1xf32> to vector<4x8x8xf32>
    %44 = arith.subf %40, %43 : vector<4x8x8xf32>
    %45 = math.exp %44 : vector<4x8x8xf32>
    %cst_17 = arith.constant dense<0.000000e+00> : vector<4x8xf32>
    %46 = vector.multi_reduction <add>, %45, %cst_17 [2] : vector<4x8x8xf32> to vector<4x8xf32>
    %47 = vector.shape_cast %46 : vector<4x8xf32> to vector<4x8x1xf32>
    %48 = tpu.reciprocal %47 {approx = true} : vector<4x8x1xf32> -> vector<4x8x1xf32>
    %49 = vector.broadcast %48 : vector<4x8x1xf32> to vector<4x8x8xf32>
    %50 = arith.mulf %45, %49 : vector<4x8x8xf32>
    %51 = arith.truncf %50 : vector<4x8x8xf32> to vector<4x8x8xbf16>
    %52 = arith.truncf %35 : vector<4x8x8xf32> to vector<4x8x8xbf16>
    "tpu.trace_start"() <{level = 10 : i32, message = "hij,hjd->hid"}> : () -> ()
    %cst_18 = arith.constant dense<0.000000e+00> : vector<4x8x8xf32>
    %53 = tpu.matmul %51, %52, %cst_18 {dimension_numbers = #tpu.dot_dimension_numbers<[2], [1], [1], [2], [0, 0, 0, 1, 1, 2], [0], [0]>} : vector<4x8x8xbf16>, vector<4x8x8xbf16>, vector<4x8x8xf32> -> vector<4x8x8xf32>
    "tpu.trace_stop"() : () -> ()
    %54 = arith.truncf %53 : vector<4x8x8xf32> to vector<4x8x8xbf16>
    %c0_19 = arith.constant 0 : index
    %c0_20 = arith.constant 0 : index
    %c0_21 = arith.constant 0 : index
    %55 = vector.load %arg5[%c0_19, %c0_20, %c0_21] : memref<4x8x32xf32, #tpu.memory_space<vmem>>, vector<4x8x32xf32>
    %56 = arith.truncf %55 : vector<4x8x32xf32> to vector<4x8x32xbf16>
    "tpu.trace_start"() <{level = 10 : i32, message = "hnd,hdk->hnk"}> : () -> ()
    %cst_22 = arith.constant dense<0.000000e+00> : vector<4x8x32xf32>
    %57 = tpu.matmul %54, %56, %cst_22 {dimension_numbers = #tpu.dot_dimension_numbers<[2], [1], [1], [2], [0, 0, 0, 1, 1, 2], [0], [0]>} : vector<4x8x8xbf16>, vector<4x8x32xbf16>, vector<4x8x32xf32> -> vector<4x8x32xf32>
    "tpu.trace_stop"() : () -> ()
    %58 = vector.extract_strided_slice %57 {offsets = [0, 0, 0], sizes = [1, 8, 32], strides = [1, 1, 1]} : vector<4x8x32xf32> to vector<1x8x32xf32>
    %59 = vector.shape_cast %58 : vector<1x8x32xf32> to vector<8x32xf32>
    %60 = vector.extract_strided_slice %57 {offsets = [1, 0, 0], sizes = [1, 8, 32], strides = [1, 1, 1]} : vector<4x8x32xf32> to vector<1x8x32xf32>
    %61 = vector.shape_cast %60 : vector<1x8x32xf32> to vector<8x32xf32>
    %62 = arith.addf %59, %61 : vector<8x32xf32>
    %63 = vector.extract_strided_slice %57 {offsets = [2, 0, 0], sizes = [1, 8, 32], strides = [1, 1, 1]} : vector<4x8x32xf32> to vector<1x8x32xf32>
    %64 = vector.shape_cast %63 : vector<1x8x32xf32> to vector<8x32xf32>
    %65 = arith.addf %62, %64 : vector<8x32xf32>
    %66 = vector.extract_strided_slice %57 {offsets = [3, 0, 0], sizes = [1, 8, 32], strides = [1, 1, 1]} : vector<4x8x32xf32> to vector<1x8x32xf32>
    %67 = vector.shape_cast %66 : vector<1x8x32xf32> to vector<8x32xf32>
    %68 = arith.addf %65, %67 : vector<8x32xf32>
    %69 = arith.addf %1, %68 : vector<8x32xf32>
    %c0_23 = arith.constant 0 : index
    %c0_24 = arith.constant 0 : index
    %70 = vector.load %arg6[%c0_23, %c0_24] : memref<1x32xf32, #tpu.memory_space<vmem>>, vector<1x32xf32>
    %71 = vector.broadcast %70 : vector<1x32xf32> to vector<8x32xf32>
    %72 = arith.addf %69, %71 : vector<8x32xf32>
    %c0_25 = arith.constant 0 : index
    %c0_26 = arith.constant 0 : index
    %73 = vector.load %arg7[%c0_25, %c0_26] : memref<1x32xf32, #tpu.memory_space<vmem>>, vector<1x32xf32>
    %c0_27 = arith.constant 0 : index
    %c0_28 = arith.constant 0 : index
    %74 = vector.load %arg8[%c0_27, %c0_28] : memref<1x32xf32, #tpu.memory_space<vmem>>, vector<1x32xf32>
    %cst_29 = arith.constant dense<0.000000e+00> : vector<8xf32>
    %75 = vector.multi_reduction <add>, %72, %cst_29 [1] : vector<8x32xf32> to vector<8xf32>
    %76 = vector.shape_cast %75 : vector<8xf32> to vector<8x1xf32>
    %cst_30 = arith.constant 3.200000e+01 : f32
    %77 = vector.broadcast %cst_30 : f32 to vector<8x1xf32>
    %78 = arith.divf %76, %77 : vector<8x1xf32>
    %79 = vector.broadcast %78 : vector<8x1xf32> to vector<8x32xf32>
    %80 = arith.subf %72, %79 : vector<8x32xf32>
    %81 = arith.mulf %80, %80 : vector<8x32xf32>
    %cst_31 = arith.constant dense<0.000000e+00> : vector<8xf32>
    %82 = vector.multi_reduction <add>, %81, %cst_31 [1] : vector<8x32xf32> to vector<8xf32>
    %83 = vector.shape_cast %82 : vector<8xf32> to vector<8x1xf32>
    %cst_32 = arith.constant 3.200000e+01 : f32
    %84 = vector.broadcast %cst_32 : f32 to vector<8x1xf32>
    %85 = arith.divf %83, %84 : vector<8x1xf32>
    %86 = vector.broadcast %78 : vector<8x1xf32> to vector<8x32xf32>
    %87 = arith.subf %72, %86 : vector<8x32xf32>
    %cst_33 = arith.constant 9.99999974E-6 : f32
    %88 = vector.broadcast %cst_33 : f32 to vector<8x1xf32>
    %89 = arith.addf %85, %88 : vector<8x1xf32>
    %90 = math.rsqrt %89 : vector<8x1xf32>
    %91 = vector.broadcast %90 : vector<8x1xf32> to vector<8x32xf32>
    %92 = arith.mulf %87, %91 : vector<8x32xf32>
    %93 = vector.broadcast %73 : vector<1x32xf32> to vector<8x32xf32>
    %94 = arith.mulf %92, %93 : vector<8x32xf32>
    %95 = vector.broadcast %74 : vector<1x32xf32> to vector<8x32xf32>
    %96 = arith.addf %94, %95 : vector<8x32xf32>
    %97 = arith.truncf %96 : vector<8x32xf32> to vector<8x32xbf16>
    %c0_34 = arith.constant 0 : index
    %c0_35 = arith.constant 0 : index
    %98 = vector.load %arg9[%c0_34, %c0_35] : memref<32x64xf32, #tpu.memory_space<vmem>>, vector<32x64xf32>
    %99 = arith.truncf %98 : vector<32x64xf32> to vector<32x64xbf16>
    %cst_36 = arith.constant dense<0.000000e+00> : vector<8x64xf32>
    %100 = tpu.matmul %97, %99, %cst_36 {dimension_numbers = #tpu.dot_dimension_numbers<[1], [0], [0], [1], [0, 0, 1, 1], [], []>} : vector<8x32xbf16>, vector<32x64xbf16>, vector<8x64xf32> -> vector<8x64xf32>
    %c0_37 = arith.constant 0 : index
    %c0_38 = arith.constant 0 : index
    %101 = vector.load %arg10[%c0_37, %c0_38] : memref<1x64xf32, #tpu.memory_space<vmem>>, vector<1x64xf32>
    %102 = vector.broadcast %101 : vector<1x64xf32> to vector<8x64xf32>
    %103 = arith.addf %100, %102 : vector<8x64xf32>
    %cst_39 = arith.constant 5.000000e-01 : f32
    %104 = vector.broadcast %cst_39 : f32 to vector<8x64xf32>
    %105 = arith.mulf %104, %103 : vector<8x64xf32>
    %cst_40 = arith.constant 4.471500e-02 : f32
    %106 = vector.broadcast %cst_40 : f32 to vector<8x64xf32>
    %107 = arith.mulf %106, %103 : vector<8x64xf32>
    %108 = arith.mulf %107, %103 : vector<8x64xf32>
    %109 = arith.mulf %108, %103 : vector<8x64xf32>
    %110 = arith.addf %103, %109 : vector<8x64xf32>
    %cst_41 = arith.constant 0.797884583 : f32
    %111 = vector.broadcast %cst_41 : f32 to vector<8x64xf32>
    %112 = arith.mulf %111, %110 : vector<8x64xf32>
    %113 = math.tanh %112 : vector<8x64xf32>
    %cst_42 = arith.constant 1.000000e+00 : f32
    %114 = vector.broadcast %cst_42 : f32 to vector<8x64xf32>
    %115 = arith.addf %114, %113 : vector<8x64xf32>
    %116 = arith.mulf %105, %115 : vector<8x64xf32>
    %117 = arith.truncf %116 : vector<8x64xf32> to vector<8x64xbf16>
    %c0_43 = arith.constant 0 : index
    %c0_44 = arith.constant 0 : index
    %118 = vector.load %arg11[%c0_43, %c0_44] : memref<64x32xf32, #tpu.memory_space<vmem>>, vector<64x32xf32>
    %119 = arith.truncf %118 : vector<64x32xf32> to vector<64x32xbf16>
    %cst_45 = arith.constant dense<0.000000e+00> : vector<8x32xf32>
    %120 = tpu.matmul %117, %119, %cst_45 {dimension_numbers = #tpu.dot_dimension_numbers<[1], [0], [0], [1], [0, 0, 1, 1], [], []>} : vector<8x64xbf16>, vector<64x32xbf16>, vector<8x32xf32> -> vector<8x32xf32>
    %c0_46 = arith.constant 0 : index
    %c0_47 = arith.constant 0 : index
    %121 = vector.load %arg12[%c0_46, %c0_47] : memref<1x32xf32, #tpu.memory_space<vmem>>, vector<1x32xf32>
    %122 = vector.broadcast %121 : vector<1x32xf32> to vector<8x32xf32>
    %123 = arith.addf %120, %122 : vector<8x32xf32>
    %124 = arith.addf %72, %123 : vector<8x32xf32>
    %c0_48 = arith.constant 0 : index
    %c0_49 = arith.constant 0 : index
    %c0_50 = arith.constant 0 : index
    %125 = vector.load %arg13[%c0_48, %c0_49, %c0_50] : memref<1x8x32xf32, #tpu.memory_space<vmem>>, vector<1x8x32xf32>
    %126 = vector.shape_cast %125 : vector<1x8x32xf32> to vector<8x32xf32>
    %127 = vector.shape_cast %124 : vector<8x32xf32> to vector<1x8x32xf32>
    tpu.vector_store %arg13[%c0_48, %c0_49, %c0_50], %127 {strides = array<i32>} : memref<1x8x32xf32, #tpu.memory_space<vmem>>, vector<1x8x32xf32>,
    return
  }
  func.func @transform_0(%arg0: i32) -> (i32, i32, i32) {
    %c0_i32 = arith.constant 0 : i32
    %c0_i32_0 = arith.constant 0 : i32
    %c0_i32_1 = arith.constant 0 : i32
    return %arg0, %c0_i32, %c0_i32_0 : i32, i32, i32
  }
  func.func @transform_1(%arg0: i32) -> (i32, i32) {
    %c0_i32 = arith.constant 0 : i32
    %c0_i32_0 = arith.constant 0 : i32
    %c0_i32_1 = arith.constant 0 : i32
    return %c0_i32, %c0_i32_0 : i32, i32
  }
  func.func @transform_2(%arg0: i32) -> (i32, i32) {
    %c0_i32 = arith.constant 0 : i32
    %c0_i32_0 = arith.constant 0 : i32
    %c0_i32_1 = arith.constant 0 : i32
    return %c0_i32, %c0_i32_0 : i32, i32
  }
  func.func @transform_3(%arg0: i32) -> (i32, i32, i32) {
    %c0_i32 = arith.constant 0 : i32
    %c0_i32_0 = arith.constant 0 : i32
    %c0_i32_1 = arith.constant 0 : i32
    %c0_i32_2 = arith.constant 0 : i32
    return %c0_i32, %c0_i32_0, %c0_i32_1 : i32, i32, i32
  }
  func.func @transform_4(%arg0: i32) -> (i32, i32, i32) {
    %c0_i32 = arith.constant 0 : i32
    %c0_i32_0 = arith.constant 0 : i32
    %c0_i32_1 = arith.constant 0 : i32
    %c0_i32_2 = arith.constant 0 : i32
    return %c0_i32, %c0_i32_0, %c0_i32_1 : i32, i32, i32
  }
  func.func @transform_5(%arg0: i32) -> (i32, i32) {
    %c0_i32 = arith.constant 0 : i32
    %c0_i32_0 = arith.constant 0 : i32
    %c0_i32_1 = arith.constant 0 : i32
    return %c0_i32, %c0_i32_0 : i32, i32
  }
  func.func @transform_6(%arg0: i32) -> (i32, i32) {
    %c0_i32 = arith.constant 0 : i32
    %c0_i32_0 = arith.constant 0 : i32
    %c0_i32_1 = arith.constant 0 : i32
    return %c0_i32, %c0_i32_0 : i32, i32
  }
  func.func @transform_7(%arg0: i32) -> (i32, i32) {
    %c0_i32 = arith.constant 0 : i32
    %c0_i32_0 = arith.constant 0 : i32
    %c0_i32_1 = arith.constant 0 : i32
    return %c0_i32, %c0_i32_0 : i32, i32
  }
  func.func @transform_8(%arg0: i32) -> (i32, i32) {
    %c0_i32 = arith.constant 0 : i32
    %c0_i32_0 = arith.constant 0 : i32
    %c0_i32_1 = arith.constant 0 : i32
    return %c0_i32, %c0_i32_0 : i32, i32
  }
  func.func @transform_9(%arg0: i32) -> (i32, i32) {
    %c0_i32 = arith.constant 0 : i32
    %c0_i32_0 = arith.constant 0 : i32
    %c0_i32_1 = arith.constant 0 : i32
    return %c0_i32, %c0_i32_0 : i32, i32
  }
  func.func @transform_10(%arg0: i32) -> (i32, i32) {
    %c0_i32 = arith.constant 0 : i32
    %c0_i32_0 = arith.constant 0 : i32
    %c0_i32_1 = arith.constant 0 : i32
    return %c0_i32, %c0_i32_0 : i32, i32
  }
  func.func @transform_11(%arg0: i32) -> (i32, i32) {
    %c0_i32 = arith.constant 0 : i32
    %c0_i32_0 = arith.constant 0 : i32
    %c0_i32_1 = arith.constant 0 : i32
    return %c0_i32, %c0_i32_0 : i32, i32
  }
  func.func @transform_12(%arg0: i32) -> (i32, i32, i32) {
    %c0_i32 = arith.constant 0 : i32
    %c0_i32_0 = arith.constant 0 : i32
    %c0_i32_1 = arith.constant 0 : i32
    return %arg0, %c0_i32, %c0_i32_0 : i32, i32, i32
  }
}

</mosaic_0001>

<bundles_post_ra>
// kernel: tpu_custom_call.1
= control target key start
LH: loop header
LB: loop body
LE: loop exit
PB: predicated region body
PF: predicated region fallthrough
CT: control target
= control target key end

     0   :  { %s2275_s0 = inlined_call_operand.vmem [shape: f32[2,8,32], index: 0, kind: input, shape index: {}]   ;;  %s2276_s1 = inlined_call_operand.vmem [shape: f32[1,32], index: 1, kind: input, shape index: {}]   ;;  %s2277_s2 = inlined_call_operand.vmem [shape: f32[1,32], index: 2, kind: input, shape index: {}]   ;;  %s2278_s3 = inlined_call_operand.vmem [shape: f32[4,32,24], index: 3, kind: input, shape index: {}]   ;;  %s2279_s4 = inlined_call_operand.vmem [shape: f32[4,8,32], index: 4, kind: input, shape index: {}]   ;;  %s2280_s5 = inlined_call_operand.vmem [shape: f32[1,32], index: 5, kind: input, shape index: {}]   ;;  %s2281_s6 = inlined_call_operand.vmem [shape: f32[1,32], index: 6, kind: input, shape index: {}]   ;;  %s2282_s7 = inlined_call_operand.vmem [shape: f32[1,32], index: 7, kind: input, shape index: {}]   ;;  %s2283_s8 = inlined_call_operand.vmem [shape: f32[32,64], index: 8, kind: input, shape index: {}]   ;;  %s2284_s9 = inlined_call_operand.vmem [shape: f32[1,64], index: 9, kind: input, shape index: {}]   ;;  %s2285_s10 = inlined_call_operand.vmem [shape: f32[64,32], index: 10, kind: input, shape index: {}]   ;;  %s2286_s11 = inlined_call_operand.vmem [shape: f32[1,32], index: 11, kind: input, shape index: {}]   ;;  %s2287_s12 = inlined_call_operand.hbm [shape: f32[2,8,32], index: 12, kind: output, shape index: {}]  }
   0x1   :  { %2288 = sst [smem:[#allocation5_spill]] %s2275_s0 }
   0x2   :  { %2289 = sst [smem:[#allocation6_spill]] %s2276_s1 }
   0x3   :  { %17 = vsyncpa [#allocation3], 0 }
   0x4   :  { %19 = vsyncpa [#allocation3 + $0x1], 0  ;;  %s1920_s21 = smov 0   ;;  %s1922_s22 = smov 0  }
   0x5   :  { %s1924_s23 = smov 0   ;;  %s1926_s24 = smov 0  }
   0x6 LB: > { %s1941_s25 = sadd.s32 4294967295, %s1848_s24   ;;  %s1518_s26 = sadd.s32 4294967294, %s1848_s24   ;;  %s1848_s24 = sphi %s1926_s24, %s2297_s24   ;;  %s1844_s23 = sphi %s1924_s23, %s2296_s23   ;;  %s1840_s22 = sphi %s1922_s22, %s2295_s22   ;;  %s1836_s21 = sphi %s1920_s21, %s2294_s21  }
   0x7   : > { %s1945_s27 = sadd.s32 1, %s1848_s24   ;;  %s289_s28 = sadd.s32 1, %s1844_s23 }
   0x8   : > { %s286_s29 = ssub.s32 %s1848_s24, %s1945_s27  ;;  %p299_p0 = scmp.ne.s32.totalorder %s1844_s23, %s1840_s22 }
   0x9   : > { %p287_p1 = scmp.eq.s32.totalorder %s286_s29, 0  ;;  %p300_p2 = scmp.eq.s32.totalorder %s1941_s25, 1 }
   0xa   : > { %p305_p3 = scmp.ne.s32.totalorder %s1840_s22, %s1836_s21  ;;  %p306_p4 = scmp.eq.s32.totalorder %s1518_s26, 1 }
   0xb   : > { %s1956_s30 = scalar_select %p287_p1, %s1844_s23, %s289_s28  }
   0xc   : > { %p1958_p5 = por %p300_p2, %p299_p0  ;;  %p1962_p6 = por %p306_p4, %p305_p3 }
   0xd   : > { %p1521_p7 = scmp.ge.s32.totalorder %s1848_s24, 1  ;;  %p364_p8 = scmp.lt.s32.totalorder %s1848_s24, 3 }
   0xf   : > { %p365_p9 = pnand %p1521_p7, %p364_p8 }
  0x10   : > { %p405_p10 = scmp.lt.s32.totalorder (!%p365_p9), %s1941_s25, 1  ;;  %vm413_vm0 = vcmask (!%p365_p9), 261120   ;;  %s2292_s0 = sld [smem:[#allocation5_spill]] (!%p365_p9)  ;;  %v443_v7 = vld [vmem:[%s2278_s3] sm:$0xff] (!%p365_p9)  ;;  %v444_v8 = vld [vmem:[%s2278_s3 + $0x8] sm:$0xff] (!%p365_p9)  ;;  %v1850_v10 = vmov (!%p365_p9), 0.0  }
  0x11   : > { %368 = sbr.rel (%p365_p9) target bundleno = 2441 (0x989), region = 68  ;;  %v447_v9 = vld [vmem:[%s2278_s3 + $0x20] sm:$0xff] (!%p365_p9)  ;;  %1597 = vmatprep.subr.bf16.mxu0 (!%p365_p9), %v1850_v10  ;;  %1605 = vmatprep.subr.bf16.mxu1 (!%p365_p9), %v1850_v10  ;;  %v459_v11 = vpack.c.bf16 (!%p365_p9), %v444_v8, %v443_v7  ;;  %v448_v12 = vld [vmem:[%s2278_s3 + $0x28] sm:$0xff] (!%p365_p9)  ;;  %v445_v13 = vld [vmem:[%s2278_s3 + $0x10] sm:$0xff] (!%p365_p9)  ;;  %vm1851_vm1 = vmmov (!%p365_p9), 0   ;;  %s2293_s1 = sld [smem:[#allocation6_spill]] (!%p365_p9) }
  0x12   : > { %v446_v14 = vld [vmem:[%s2278_s3 + $0x18] sm:$0xff] (!%p365_p9)  ;;  %v461_v15 = vpack.c.bf16 (!%p365_p9), %v448_v12, %v447_v9  ;;  %v449_v16 = vld [vmem:[%s2278_s3 + $0x30] sm:$0xff] (!%p365_p9)  ;;  %1601 = vmatprep.mubr.msk.bf16.mxu0 (!%p365_p9), %vm1851_vm1, %v1850_v10  ;;  %1609 = vmatprep.mubr.msk.bf16.mxu1 (!%p365_p9), %vm1851_vm1, %v1850_v10  ;;  %v1525_v26 = vld [vmem:[%s2277_s2] ss:$0 sm:$0xff] (!%p365_p9)  ;;  %vm637_vm2 = vcmask (!%p365_p9), 64512   ;;  %s1853_s17 = smov (!%p365_p9), 112  }
  0x13   : > { %v450_v17 = vld [vmem:[%s2278_s3 + $0x38] sm:$0xff] (!%p365_p9)  ;;  %1598 = vmatpush3.bf16.msra.mxu0 (!%p365_p9), %v459_v11  ;;  %v460_v18 = vpack.c.bf16 (!%p365_p9), %v446_v14, %v445_v13  ;;  %v451_v27 = vld [vmem:[%s2278_s3 + $0x40] sm:$0xff] (!%p365_p9)  ;;  %v452_v29 = vld [vmem:[%s2278_s3 + $0x48] sm:$0xff] (!%p365_p9)  ;;  %vm888_vm3 = vcmask (!%p365_p9), 1043456   ;;  %vm1399_vm4 = vcmask (!%p365_p9), 523264   ;;  %s402_s18 = sand.u32 (!%p365_p9), 1, %s1840_s22  }
  0x14   : > { %1606 = vmatpush3.bf16.msra.mxu1 (!%p365_p9), %v461_v15  ;;  %1599 = vmatprep.subr.bf16.mxu0 (!%p365_p9), %v1850_v10  ;;  %v462_v19 = vpack.c.bf16 (!%p365_p9), %v450_v17, %v449_v16  ;;  %v455_v30 = vld [vmem:[%s2278_s3 + $0x60] sm:$0xff] (!%p365_p9)  ;;  %v456_v31 = vld [vmem:[%s2278_s3 + $0x68] sm:$0xff] (!%p365_p9)  ;;  %v463_v33 = vpack.c.bf16 (!%p365_p9), %v452_v29, %v451_v27  ;;  %v453_v35 = vld [vmem:[%s2278_s3 + $0x50] sm:$0xff] (!%p365_p9)  ;;  %s1550_s28 = sshll.u32 (!%p365_p9), %s1941_s25, 7  ;;  %s1854_s20 = smov (!%p365_p9), [#allocation2]  }
  0x15   : > { %1607 = vmatprep.subr.bf16.mxu1 (!%p365_p9), %v1850_v10  ;;  %v465_v34 = vpack.c.bf16 (!%p365_p9), %v456_v31, %v455_v30  ;;  %v454_v37 = vld [vmem:[%s2278_s3 + $0x58] sm:$0xff] (!%p365_p9)  ;;  %v457_v38 = vld [vmem:[%s2278_s3 + $0x70] sm:$0xff] (!%p365_p9)  ;;  %s1790_s26 = sshll.u32 (!%p365_p9), %s1854_s20, 4  ;;  %s1791_s26 = int_to_ptr.vmem [resolvable:$false] %s1790_s26 }
  0x16   : > { %v458_v39 = vld [vmem:[%s2278_s3 + $0x78] sm:$0xff] (!%p365_p9)  ;;  %v464_v40 = vpack.c.bf16 (!%p365_p9), %v454_v37, %v453_v35 }
  0x17   : > { %1600 = vmatpush3.bf16.msra.mxu0 (!%p365_p9), %v460_v18  ;;  %v1524_v24 = vld [vmem:[%s2293_s1] ss:$0 sm:$0xff] (!%p365_p9)  ;;  %v466_v41 = vpack.c.bf16 (!%p365_p9), %v458_v39, %v457_v38  ;;  %s1792_s1 = scalar_lea.vmem (!%p365_p9), %s1791_s26, 256 }
  0x18   : > { %s406_s15 = scalar_select %p405_p10, %s1941_s25, 1  ;;  %1608 = vmatpush3.bf16.msra.mxu1 %v462_v19  ;;  %1613 = vmatprep.subr.bf16.mxu0 %v1850_v10 }
  0x19   : > { %1621 = vmatprep.subr.bf16.mxu1 %v1850_v10  ;;  %s1446_s25 = scalar_lea.sflag [#allocation3], %s402_s18 }
  0x1a   : > { %s1523_s16 = sshll.u32 %s406_s15, 3 }
  0x1b   : > { %s408_s19 = scalar_lea.vmem %s2292_s0, %s1523_s16  ;;  %s1852_s0 = smov 120  }
  0x1c   : > { %v1973_v0 = vld [vmem:[%s408_s19] sm:$0xff]  ;;  %s1522_s19 = sshll.u32 %s402_s18, 3 }
  0x1d   : > { %v414_v1 = vsel %vm413_vm0, %v1973_v0, 0.0  ;;  %s404_s29 = scalar_lea.vmem [#allocation2], %s1522_s19 }
  0x1e   : > { %415 = vadd.xlane.f32.xlu0 %v414_v1  ;;  %s1459_s15 = sshll.u32 %s404_s29, 4  ;;  %s2234_s15 = int_to_ptr.vmem [resolvable:$true] %s1459_s15 }
  0x1f   : > { %s1786_s19 = scalar_lea.vmem %s2234_s15, 128  ;;  %p1793_p0 = scmp.lt.s32.totalorder %s2234_s15, %s1791_s26 }
  0x20   : > { %p1787_p11 = scmp.ne.s32.totalorder %s2234_s15, %s1786_s19  ;;  %p1794_p1 = scmp.lt.s32.totalorder %s1792_s1, %s1786_s19 }
  0x22   : > { %p1788_p12 = pnand %p1787_p11, %p1958_p5  ;;  %p1795_p2 = por %p1794_p1, %p1793_p0 }
  0x24   : > { %p1789_p13 = pneg %p1788_p12 }
  0x26   : > { %p1796_p3 = pnand %p1795_p2, %p1789_p13 }
  0xab   : > { %v416_v2 = vpop.xlane.xlu0 %415 }
  0xac   : > { %v418_v3 = vmul.f32 0.03125, %v416_v2 }
  0xae   : > { %v419_v4 = vsub.f32 %v1973_v0, %v418_v3 }
  0xb0   : > { %v420_v5 = vmul.f32 %v419_v4, %v419_v4 }
  0xb2   : > { %v421_v6 = vsel %vm413_vm0, %v420_v5, 0.0 }
  0xb3   : > { %422 = vadd.xlane.f32.xlu0 %v421_v6 }
 0x140   : > { %v423_v20 = vpop.xlane.xlu0 %422 }
 0x141   : > { %v424_v21 = vmul.f32 0.03125, %v423_v20 }
 0x143   : > { %v425_v22 = vadd.f32 1e-05, %v424_v21 }
 0x145   : > { %1764 = vrsqrt.f32 %v425_v22 }
 0x14f   : > { %v1765_v23 = vpop.eup %1764 }
 0x150   : > { %v427_v25 = vmul.f32 %v1765_v23, %v419_v4 }
 0x152   : > { %v434_v28 = vmul.f32 %v1524_v24, %v427_v25 }
 0x154   : > { %v441_v32 = vadd.f32 %v1525_v26, %v434_v28 }
 0x156   : > { %v442_v36 = vpack.c.bf16 %v441_v32, %v441_v32 }
 0x158   : > { %1602 = vmatmul.mubr.msk.bf16.vlgmr.msra.gmra.mrb[0].mxu0 %vm413_vm0, %v442_v36  ;;  %1610 = vmatmul.mubr.msk.bf16.vlgmr.msra.gmra.mrb[0].mxu1 %vm413_vm0, %v442_v36 }
 0x159   : > { %1614 = vmatpush3.bf16.msra.mxu0 %v463_v33  ;;  %1622 = vmatpush3.bf16.msra.mxu1 %v465_v34 }
 0x15a   : > { %1615 = vmatprep.subr.bf16.mxu0 %v1850_v10  ;;  %1623 = vmatprep.subr.bf16.mxu1 %v1850_v10 }
 0x15b   : > { %1617 = vmatprep.mubr.msk.bf16.mxu0 %vm1851_vm1, %v1850_v10  ;;  %1625 = vmatprep.mubr.msk.bf16.mxu1 %vm1851_vm1, %v1850_v10 }
 0x15d   : > { %1616 = vmatpush3.bf16.msra.mxu0 %v464_v40  ;;  %1624 = vmatpush3.bf16.msra.mxu1 %v466_v41 }
 0x15e   : > { %1629 = vmatprep.subr.bf16.mxu0 %v1850_v10  ;;  %1635 = vmatprep.subr.bf16.mxu1 %v1850_v10 }
 0x160   : > { %1618 = vmatmul.mubr.msk.bf16.vlgmr.msra.gmra.mrb[4].mxu0 %vm413_vm0, %v442_v36  ;;  %1626 = vmatmul.mubr.msk.bf16.vlgmr.msra.gmra.mrb[4].mxu1 %vm413_vm0, %v442_v36 }
 0x161   : > { %1631 = vmatprep.mubr.msk.bf16.mxu0 %vm1851_vm1, %v1850_v10  ;;  %1637 = vmatprep.mubr.msk.bf16.mxu1 %vm1851_vm1, %v1850_v10 }
 0x22b   : > { %v504_v42 = vpop.f32.mrb[0].mxu0  ;;  %v544_v43 = vpop.f32.mrb[0].mxu1 }
 0x22c   : > { %v2059_v44 = vpack.c.bf16 %v504_v42, %v504_v42  ;;  %v1603_v45 = vpop.f32.mrb[1].mxu0  ;;  %v1611_v46 = vpop.f32.mrb[1].mxu1  ;;  %v2062_v51 = vpack.c.bf16 %v544_v43, %v544_v43 }
 0x22d   : > { %v507_v47 = vpop.f32.mrb[2].mxu0  ;;  %v547_v48 = vpop.f32.mrb[2].mxu1 }
 0x22e   : > { %v1612_v49 = vpop.f32.mrb[3].mxu1  ;;  %635 = vrot.lane.b32.xlu1 %v2059_v44, %s1852_s0  ;;  %v1604_v50 = vpop.f32.mrb[3].mxu0 }
 0x232   : > { %685 = vrot.lane.b32.xlu1 %v2062_v51, %s1852_s0 }
 0x233   : > { %v584_v52 = vpop.f32.mrb[4].mxu0  ;;  %v624_v53 = vpop.f32.mrb[4].mxu1 }
 0x234   : > { %v2065_v54 = vpack.c.bf16 %v584_v52, %v584_v52  ;;  %v2067_v55 = vpack.c.bf16 %v624_v53, %v624_v53  ;;  %v1619_v56 = vpop.f32.mrb[5].mxu0  ;;  %v1627_v57 = vpop.f32.mrb[5].mxu1 }
 0x235   : > { %v587_v58 = vpop.f32.mrb[6].mxu0  ;;  %v627_v59 = vpop.f32.mrb[6].mxu1 }
 0x236   : > { %v1628_v60 = vpop.f32.mrb[7].mxu1  ;;  %783 = vrot.lane.b32.xlu1 %v2067_v55, %s1852_s0  ;;  %734 = vrot.lane.b32.xlu0 %v2065_v54, %s1852_s0  ;;  %v1620_v61 = vpop.f32.mrb[7].mxu0 }
 0x2a0   : > { %v636_v62 = vpop.permute.xlu1 %635 }
 0x2a1   : > { %v642_v63 = vsel %vm637_vm2, %v636_v62, 0 }
 0x2a2   : > { %1630 = vmatpush3.bf16.xpose.msra.mxu0 %v642_v63 }
 0x2a3   : > { %1641 = vmatprep.subr.bf16.mxu0 %v1850_v10 }
 0x2a4   : > { %v686_v1 = vpop.permute.xlu1 %685 }
 0x2a5   : > { %v691_v2 = vsel %vm637_vm2, %v686_v1, 0 }
 0x2a6   : > { %1636 = vmatpush3.bf16.xpose.msra.mxu1 %v691_v2 }
 0x2a7   : > { %1647 = vmatprep.subr.bf16.mxu1 %v1850_v10 }
 0x2a8   : > { %v735_v3 = vpop.permute.xlu0 %734  ;;  %v784_v5 = vpop.permute.xlu1 %783 }
 0x2a9   : > { %v740_v4 = vsel %vm637_vm2, %v735_v3, 0  ;;  %1632 = vmatmul.mubr.msk.bf16.vlgmr.msra.gmra.mrb[8].mxu0 %vm637_vm2, %v2059_v44  ;;  %v789_v6 = vsel %vm637_vm2, %v784_v5, 0  ;;  %v1080_v3 = vld [vmem:[%s2279_s4] sm:$0xff] }
 0x2aa   : > { %1642 = vmatpush3.bf16.xpose.msra.mxu0 %v740_v4  ;;  %1643 = vmatprep.mubr.msk.bf16.mxu0 %vm1851_vm1, %v1850_v10 }
 0x2ab   : > { %1653 = vmatprep.subr.bf16.mxu0 %v1850_v10 }
 0x2ad   : > { %1638 = vmatmul.mubr.msk.bf16.vlgmr.msra.gmra.mrb[8].mxu1 %vm637_vm2, %v2062_v51 }
 0x2ae   : > { %1648 = vmatpush3.bf16.xpose.msra.mxu1 %v789_v6  ;;  %1649 = vmatprep.mubr.msk.bf16.mxu1 %vm1851_vm1, %v1850_v10 }
 0x2af   : > { %1659 = vmatprep.subr.bf16.mxu1 %v1850_v10 }
 0x2b1   : > { %1644 = vmatmul.mubr.msk.bf16.vlgmr.msra.gmra.mrb[12].mxu0 %vm637_vm2, %v2065_v54 }
 0x2b2   : > { %1655 = vmatprep.mubr.msk.bf16.mxu0 %vm1851_vm1, %v1850_v10 }
 0x2b5   : > { %1650 = vmatmul.mubr.msk.bf16.vlgmr.msra.gmra.mrb[12].mxu1 %vm637_vm2, %v2067_v55 }
 0x2b6   : > { %1661 = vmatprep.mubr.msk.bf16.mxu1 %vm1851_vm1, %v1850_v10 }
 0x37c   : > { %v678_v7 = vpop.f32.mrb[8].mxu0 }
 0x37d   : > { %v831_v8 = vmul.f32 0.35355338, %v678_v7  ;;  %v1633_v9 = vpop.f32.mrb[9].mxu0  ;;  %v1084_v7 = vpack.c.bf16 %v1080_v3, %v1080_v3 }
 0x37e   : > { %v681_v11 = vpop.f32.mrb[10].mxu0 }
 0x37f   : > { %v1634_v12 = vpop.f32.mrb[11].mxu0  ;;  %v835_v13 = vsel %vm637_vm2, %v831_v8, -inf }
 0x380   : > { %v727_v14 = vpop.f32.mrb[8].mxu1  ;;  %836 = vmax.xlane.f32.xlu1 %v835_v13  ;;  %v1092_v13 = vsel %vm888_vm3, %v1084_v7, 0 }
 0x381   : > { %v832_v15 = vmul.f32 0.35355338, %v727_v14  ;;  %v1639_v16 = vpop.f32.mrb[9].mxu1 }
 0x382   : > { %v730_v17 = vpop.f32.mrb[10].mxu1 }
 0x383   : > { %v1640_v18 = vpop.f32.mrb[11].mxu1  ;;  %v838_v19 = vsel %vm637_vm2, %v832_v15, -inf  ;;  %v1081_v17 = vld [vmem:[%s2279_s4 + $0x8] sm:$0xff] }
 0x384   : > { %839 = vmax.xlane.f32.xlu0 %v838_v19  ;;  %v776_v20 = vpop.f32.mrb[12].mxu0  ;;  %v1085_v18 = vpack.c.bf16 %v1081_v17, %v1081_v17 }
 0x385   : > { %v833_v21 = vmul.f32 0.35355338, %v776_v20  ;;  %v1645_v22 = vpop.f32.mrb[13].mxu0  ;;  %v1082_v20 = vld [vmem:[%s2279_s4 + $0x10] sm:$0xff] }
 0x386   : > { %v779_v23 = vpop.f32.mrb[14].mxu0  ;;  %v1138_v19 = vsel %vm888_vm3, %v1085_v18, 0  ;;  %v1083_v22 = vld [vmem:[%s2279_s4 + $0x18] sm:$0xff] }
 0x387   : > { %v1646_v24 = vpop.f32.mrb[15].mxu0  ;;  %v841_v25 = vsel %vm637_vm2, %v833_v21, -inf }
 0x388   : > { %v825_v26 = vpop.f32.mrb[12].mxu1  ;;  %842 = vmax.xlane.f32.xlu1 %v841_v25 }
 0x389   : > { %v834_v27 = vmul.f32 0.35355338, %v825_v26  ;;  %v1651_v28 = vpop.f32.mrb[13].mxu1 }
 0x38a   : > { %v828_v29 = vpop.f32.mrb[14].mxu1 }
 0x38b   : > { %v1652_v30 = vpop.f32.mrb[15].mxu1  ;;  %v844_v31 = vsel %vm637_vm2, %v834_v27, -inf }
 0x38c   : > { %845 = vmax.xlane.f32.xlu1 %v844_v31 }
 0x39a   : > { %883 = vrot.lane.b32.xlu0 %v2059_v44, %s1853_s17 }
 0x39d   : > { %932 = vrot.lane.b32.xlu1 %v2062_v51, %s1853_s17 }
 0x40d   : > { %v837_v32 = vpop.xlane.xlu1 %836 }
 0x40e   : > { %v847_v33 = vsub.f32 %v831_v8, %v837_v32 }
 0x410   : > { %v851_v34 = vmul.f32 1.442695, %v847_v33 }
 0x411   : > { %v840_v35 = vpop.xlane.xlu0 %839 }
 0x412   : > { %1766 = vpow2.f32 %v851_v34  ;;  %v848_v36 = vsub.f32 %v832_v15, %v840_v35 }
 0x414   : > { %v853_v37 = vmul.f32 1.442695, %v848_v36 }
 0x415   : > { %v884_v38 = vpop.permute.xlu0 %883  ;;  %v843_v39 = vpop.xlane.xlu1 %842 }
 0x416   : > { %1768 = vpow2.f32 %v853_v37  ;;  %v890_v40 = vsel %vm888_vm3, %v884_v38, 0  ;;  %v849_v41 = vsub.f32 %v833_v21, %v843_v39  ;;  %v1086_v21 = vpack.c.bf16 %v1082_v20, %v1082_v20 }
 0x417   : > { %1654 = vmatpush3.bf16.msra.mxu0 %v890_v40 }
 0x418   : > { %v855_v42 = vmul.f32 1.442695, %v849_v41  ;;  %1665 = vmatprep.subr.bf16.mxu0 %v1850_v10  ;;  %v1184_v26 = vsel %vm888_vm3, %v1086_v21, 0  ;;  %v1543_v21 = vld [vmem:[%s2281_s6] ss:$0 sm:$0xff] }
 0x419   : > { %v846_v43 = vpop.xlane.xlu1 %845 }
 0x41a   : > { %1770 = vpow2.f32 %v855_v42  ;;  %v850_v44 = vsub.f32 %v834_v27, %v846_v43  ;;  %v1087_v27 = vpack.c.bf16 %v1083_v22, %v1083_v22 }
 0x41c   : > { %v1767_v45 = vpop.eup %1766  ;;  %v857_v46 = vmul.f32 1.442695, %v850_v44  ;;  %v1230_v33 = vsel %vm888_vm3, %v1087_v27, 0  ;;  %v1380_v27 = vld [vmem:[%s2285_s10] sm:$0xff] }
 0x41d   : > { %v933_v47 = vpop.permute.xlu1 %932  ;;  %v859_v48 = vsel %vm637_vm2, %v1767_v45, 0.0 }
 0x41e   : > { %1772 = vpow2.f32 %v857_v46  ;;  %v938_v49 = vsel %vm888_vm3, %v933_v47, 0  ;;  %860 = vadd.xlane.f32.xlu1 %v859_v48 }
 0x41f   : > { %1660 = vmatpush3.bf16.msra.mxu1 %v938_v49 }
 0x420   : > { %v1769_v50 = vpop.eup %1768  ;;  %1671 = vmatprep.subr.bf16.mxu1 %v1850_v10 }
 0x421   : > { %v862_v51 = vsel %vm637_vm2, %v1769_v50, 0.0 }
 0x422   : > { %863 = vadd.xlane.f32.xlu1 %v862_v51 }
 0x424   : > { %v1771_v52 = vpop.eup %1770 }
 0x425   : > { %v865_v53 = vsel %vm637_vm2, %v1771_v52, 0.0 }
 0x426   : > { %866 = vadd.xlane.f32.xlu0 %v865_v53 }
 0x428   : > { %v1773_v56 = vpop.eup %1772 }
 0x429   : > { %v868_v57 = vsel %vm637_vm2, %v1773_v56, 0.0 }
 0x42a   : > { %869 = vadd.xlane.f32.xlu1 %v868_v57 }
 0x43b   : > { %980 = vrot.lane.b32.xlu1 %v2065_v54, %s1853_s17 }
 0x43c   : > { %1028 = vrot.lane.b32.xlu0 %v2067_v55, %s1853_s17  ;;  %s2232_s17 = scalar_lea.hbm %s2287_s12, %s1550_s28 }
 0x4ab   : > { %v861_v58 = vpop.xlane.xlu1 %860 }
 0x4ac   : > { %1774 = vrcp.f32 %v861_v58 }
 0x4af   : > { %v864_v59 = vpop.xlane.xlu1 %863 }
 0x4b0   : > { %1776 = vrcp.f32 %v864_v59 }
 0x4b3   : > { %v867_v60 = vpop.xlane.xlu0 %866 }
 0x4b4   : > { %1778 = vrcp.f32 %v867_v60 }
 0x4b6   : > { %v1775_v61 = vpop.eup %1774 }
 0x4b7   : > { %v875_v62 = vmul.f32 %v1775_v61, %v1767_v45  ;;  %v870_v63 = vpop.xlane.xlu1 %869  ;;  %v1029_v4 = vpop.permute.xlu0 %1028 }
 0x4b8   : > { %1780 = vrcp.f32 %v870_v63  ;;  %v1034_v11 = vsel %vm888_vm3, %v1029_v4, 0 }
 0x4b9   : > { %v879_v1 = vpack.c.bf16 %v875_v62, %v875_v62 }
 0x4ba   : > { %v1777_v2 = vpop.eup %1776 }
 0x4bb   : > { %v876_v54 = vmul.f32 %v1777_v2, %v1769_v50  ;;  %1656 = vmatmul.mubr.msk.bf16.vlgmr.msra.gmra.mrb[16].mxu0 %vm637_vm2, %v879_v1  ;;  %v981_v55 = vpop.permute.xlu1 %980  ;;  %v1542_v2 = vld [vmem:[%s2280_s5] ss:$0 sm:$0xff] }
 0x4bc   : > { %v986_v5 = vsel %vm888_vm3, %v981_v55, 0  ;;  %1667 = vmatprep.mubr.msk.bf16.mxu0 %vm1851_vm1, %v1850_v10 }
 0x4bd   : > { %1666 = vmatpush3.bf16.msra.mxu0 %v986_v5  ;;  %v880_v6 = vpack.c.bf16 %v876_v54, %v876_v54 }
 0x4be   : > { %v1779_v8 = vpop.eup %1778  ;;  %1677 = vmatprep.subr.bf16.mxu0 %v1850_v10 }
 0x4bf   : > { %v877_v9 = vmul.f32 %v1779_v8, %v1771_v52  ;;  %1662 = vmatmul.mubr.msk.bf16.vlgmr.msra.gmra.mrb[16].mxu1 %vm637_vm2, %v880_v6 }
 0x4c0   : > { %1672 = vmatpush3.bf16.msra.mxu1 %v1034_v11  ;;  %1673 = vmatprep.mubr.msk.bf16.mxu1 %vm1851_vm1, %v1850_v10 }
 0x4c1   : > { %v881_v12 = vpack.c.bf16 %v877_v9, %v877_v9  ;;  %1683 = vmatprep.subr.bf16.mxu1 %v1850_v10 }
 0x4c2   : > { %v1781_v14 = vpop.eup %1780 }
 0x4c3   : > { %v878_v15 = vmul.f32 %v1781_v14, %v1773_v56  ;;  %1668 = vmatmul.mubr.msk.bf16.vlgmr.msra.gmra.mrb[20].mxu0 %vm637_vm2, %v881_v12  ;;  %v1314_v12 = vld [vmem:[%s2283_s8] sm:$0xff]  ;;  %v1316_v14 = vld [vmem:[%s2283_s8 + $0x10] sm:$0xff] }
 0x4c4   : > { %1678 = vmatpush3.bf16.msra.mxu0 %v1092_v13  ;;  %1679 = vmatprep.mubr.msk.bf16.mxu0 %vm1851_vm1, %v1850_v10 }
 0x4c5   : > { %v882_v16 = vpack.c.bf16 %v878_v15, %v878_v15  ;;  %1689 = vmatprep.subr.bf16.mxu0 %v1850_v10  ;;  %v1317_v15 = vld [vmem:[%s2283_s8 + $0x18] sm:$0xff] }
 0x4c7   : > { %1674 = vmatmul.mubr.msk.bf16.vlgmr.msra.gmra.mrb[20].mxu1 %vm637_vm2, %v882_v16  ;;  %v1319_v16 = vpack.c.bf16 %v1317_v15, %v1316_v14 }
 0x4c8   : > { %1685 = vmatprep.mubr.msk.bf16.mxu1 %vm1851_vm1, %v1850_v10  ;;  %1684 = vmatpush3.bf16.msra.mxu1 %v1138_v19 }
 0x4c9   : > { %1695 = vmatprep.subr.bf16.mxu1 %v1850_v10 }
 0x58e   : > { %v926_v23 = vpop.f32.mrb[16].mxu0 }
 0x58f   : > { %v1076_v24 = vpack.c.bf16 %v926_v23, %v926_v23  ;;  %v1657_v25 = vpop.f32.mrb[17].mxu0  ;;  %v1544_v23 = vld [vmem:[%s2282_s7] ss:$0 sm:$0xff] }
 0x590   : > { %v929_v28 = vpop.f32.mrb[18].mxu0 }
 0x591   : > { %v1658_v29 = vpop.f32.mrb[19].mxu0  ;;  %1680 = vmatmul.mubr.msk.bf16.vlgmr.msra.gmra.mrb[24].mxu0 %vm637_vm2, %v1076_v24  ;;  %v1381_v28 = vld [vmem:[%s2285_s10 + $0x8] sm:$0xff] }
 0x592   : > { %v974_v30 = vpop.f32.mrb[16].mxu1  ;;  %1690 = vmatpush3.bf16.msra.mxu0 %v1184_v26  ;;  %1691 = vmatprep.mubr.msk.bf16.mxu0 %vm1851_vm1, %v1850_v10  ;;  %v1382_v29 = vld [vmem:[%s2285_s10 + $0x10] sm:$0xff] }
 0x593   : > { %v1077_v31 = vpack.c.bf16 %v974_v30, %v974_v30  ;;  %v1663_v32 = vpop.f32.mrb[17].mxu1  ;;  %1701 = vmatprep.subr.bf16.mxu0 %v1850_v10  ;;  %v1388_v30 = vpack.c.bf16 %v1381_v28, %v1380_v27 }
 0x594   : > { %v977_v34 = vpop.f32.mrb[18].mxu1 }
 0x595   : > { %v1664_v35 = vpop.f32.mrb[19].mxu1  ;;  %1686 = vmatmul.mubr.msk.bf16.vlgmr.msra.gmra.mrb[24].mxu1 %vm637_vm2, %v1077_v31  ;;  %v1383_v31 = vld [vmem:[%s2285_s10 + $0x18] sm:$0xff]  ;;  %v1385_v34 = vld [vmem:[%s2285_s10 + $0x28] sm:$0xff] }
 0x596   : > { %v1022_v36 = vpop.f32.mrb[20].mxu0  ;;  %1696 = vmatpush3.bf16.msra.mxu1 %v1230_v33  ;;  %1697 = vmatprep.mubr.msk.bf16.mxu1 %vm1851_vm1, %v1850_v10  ;;  %v1389_v32 = vpack.c.bf16 %v1383_v31, %v1382_v29  ;;  %v1384_v33 = vld [vmem:[%s2285_s10 + $0x20] sm:$0xff] }
 0x597   : > { %v1078_v37 = vpack.c.bf16 %v1022_v36, %v1022_v36  ;;  %v1669_v38 = vpop.f32.mrb[21].mxu0  ;;  %1709 = vmatprep.subr.bf16.mxu1 %v1850_v10  ;;  %v1390_v35 = vpack.c.bf16 %v1385_v34, %v1384_v33  ;;  %v1386_v36 = vld [vmem:[%s2285_s10 + $0x30] sm:$0xff] }
 0x598   : > { %v1025_v39 = vpop.f32.mrb[22].mxu0 }
 0x599   : > { %v1670_v40 = vpop.f32.mrb[23].mxu0  ;;  %1692 = vmatmul.mubr.msk.bf16.vlgmr.msra.gmra.mrb[28].mxu0 %vm637_vm2, %v1078_v37  ;;  %v1387_v37 = vld [vmem:[%s2285_s10 + $0x38] sm:$0xff]  ;;  %v1545_v39 = vld [vmem:[%s2284_s9] ss:$0 sm:$0xff] }
 0x59a   : > { %v1070_v41 = vpop.f32.mrb[20].mxu1  ;;  %1705 = vmatprep.mubr.msk.bf16.mxu0 %vm1851_vm1, %v1850_v10  ;;  %v1391_v38 = vpack.c.bf16 %v1387_v37, %v1386_v36 }
 0x59b   : > { %v1079_v42 = vpack.c.bf16 %v1070_v41, %v1070_v41  ;;  %v1675_v43 = vpop.f32.mrb[21].mxu1 }
 0x59c   : > { %v1073_v44 = vpop.f32.mrb[22].mxu1 }
 0x59d   : > { %v1676_v45 = vpop.f32.mrb[23].mxu1  ;;  %1698 = vmatmul.mubr.msk.bf16.vlgmr.msra.gmra.mrb[28].mxu1 %vm637_vm2, %v1079_v42 }
 0x59e   : > { %1717 = vmatprep.mubr.msk.bf16.mxu1 %vm1851_vm1, %v1850_v10  ;;  %1710 = vmatpush3.bf16.msra.mxu1 %v1388_v30 }
 0x59f   : > { %1711 = vmatprep.subr.bf16.mxu1 %v1850_v10 }
 0x5a2   : > { %1712 = vmatpush3.bf16.msra.mxu1 %v1389_v32 }
 0x5a3   : > { %1713 = vmatprep.subr.bf16.mxu1 %v1850_v10 }
 0x5a6   : > { %1714 = vmatpush3.bf16.msra.mxu1 %v1390_v35 }
 0x5a7   : > { %1715 = vmatprep.subr.bf16.mxu1 %v1850_v10 }
 0x5aa   : > { %1716 = vmatpush3.bf16.msra.mxu1 %v1391_v38 }
 0x664   : > { %v1128_v46 = vpop.f32.mrb[24].mxu0 }
 0x665   : > { %v1681_v47 = vpop.f32.mrb[25].mxu0 }
 0x666   : > { %v1131_v48 = vpop.f32.mrb[26].mxu0 }
 0x667   : > { %v1682_v49 = vpop.f32.mrb[27].mxu0 }
 0x668   : > { %v1174_v50 = vpop.f32.mrb[24].mxu1 }
 0x669   : > { %v1272_v51 = vadd.f32 %v1174_v50, %v1128_v46  ;;  %v1687_v52 = vpop.f32.mrb[25].mxu1 }
 0x66a   : > { %v1177_v53 = vpop.f32.mrb[26].mxu1 }
 0x66b   : > { %v1688_v56 = vpop.f32.mrb[27].mxu1 }
 0x66c   : > { %v1220_v57 = vpop.f32.mrb[28].mxu0  ;;  %v1547_v56 = vld [vmem:[%s2286_s11] ss:$0 sm:$0xff] }
 0x66d   : > { %v1273_v58 = vadd.f32 %v1272_v51, %v1220_v57  ;;  %v1693_v59 = vpop.f32.mrb[29].mxu0 }
 0x66e   : > { %v1223_v60 = vpop.f32.mrb[30].mxu0 }
 0x66f   : > { %v1694_v61 = vpop.f32.mrb[31].mxu0 }
 0x670   : > { %v1266_v62 = vpop.f32.mrb[28].mxu1 }
 0x671   : > { %v1274_v63 = vadd.f32 %v1273_v58, %v1266_v62  ;;  %v1699_v1 = vpop.f32.mrb[29].mxu1 }
 0x672   : > { %v1269_v3 = vpop.f32.mrb[30].mxu1 }
 0x673   : > { %v1275_v54 = vadd.f32 %v1274_v63, %v1973_v0  ;;  %v1700_v55 = vpop.f32.mrb[31].mxu1  ;;  %v1315_v0 = vld [vmem:[%s2283_s8 + $0x8] sm:$0xff] }
 0x674   : > { %v1318_v13 = vpack.c.bf16 %v1315_v0, %v1314_v12 }
 0x675   : > { %v2167_v4 = vadd.f32 %v1542_v2, %v1275_v54 }
 0x676   : > { %1702 = vmatpush3.bf16.msra.mxu0 %v1318_v13 }
 0x677   : > { %v1286_v5 = vsel %vm413_vm0, %v2167_v4, 0.0  ;;  %1703 = vmatprep.subr.bf16.mxu0 %v1850_v10 }
 0x678   : > { %1287 = vadd.xlane.f32.xlu1 %v1286_v5 }
 0x67a   : > { %1704 = vmatpush3.bf16.msra.mxu0 %v1319_v16 }
 0x705   : > { %v1288_v6 = vpop.xlane.xlu1 %1287 }
 0x706   : > { %v1289_v7 = vmul.f32 0.03125, %v1288_v6 }
 0x708   : > { %v1290_v8 = vsub.f32 %v2167_v4, %v1289_v7 }
 0x70a   : > { %v1291_v9 = vmul.f32 %v1290_v8, %v1290_v8 }
 0x70c   : > { %v1292_v11 = vsel %vm413_vm0, %v1291_v9, 0.0 }
 0x70d   : > { %1293 = vadd.xlane.f32.xlu0 %v1292_v11 }
 0x79a   : > { %v1294_v17 = vpop.xlane.xlu0 %1293 }
 0x79b   : > { %v1295_v18 = vmul.f32 0.03125, %v1294_v17 }
 0x79d   : > { %v1296_v19 = vadd.f32 1e-05, %v1295_v18 }
 0x79f   : > { %1782 = vrsqrt.f32 %v1296_v19 }
 0x7a9   : > { %v1783_v20 = vpop.eup %1782 }
 0x7aa   : > { %v1298_v22 = vmul.f32 %v1783_v20, %v1290_v8 }
 0x7ac   : > { %v1305_v24 = vmul.f32 %v1543_v21, %v1298_v22 }
 0x7ae   : > { %v1312_v25 = vadd.f32 %v1544_v23, %v1305_v24 }
 0x7b0   : > { %v1313_v26 = vpack.c.bf16 %v1312_v25, %v1312_v25 }
 0x7b2   : > { %1706 = vmatmul.mubr.msk.bf16.vlgmr.msra.gmra.mrb[32].mxu0 %vm413_vm0, %v1313_v26 }
 0x885   : > { %v1364_v40 = vpop.f32.mrb[32].mxu0 }
 0x886   : > { %v1365_v41 = vadd.f32 %v1545_v39, %v1364_v40  ;;  %v1707_v42 = vpop.f32.mrb[33].mxu0 }
 0x887   : > { %v1367_v43 = vpop.f32.mrb[34].mxu0 }
 0x888   : > { %v1371_v44 = vmul.f32 0.044715, %v1365_v41  ;;  %v1708_v45 = vpop.f32.mrb[35].mxu0  ;;  %v1370_v10 = vmul.f32 0.5, %v1365_v41 }
 0x88a   : > { %v1372_v46 = vmul.f32 %v1371_v44, %v1365_v41 }
 0x88c   : > { %v1373_v47 = vmul.f32 %v1372_v46, %v1365_v41 }
 0x88e   : > { %v1374_v48 = vadd.f32 %v1373_v47, %v1365_v41 }
 0x890   : > { %v1375_v49 = vmul.f32 0.7978846, %v1374_v48 }
 0x892   : > { %1784 = vtanh.f32 %v1375_v49 }
 0x89c   : > { %v1785_v50 = vpop.eup %1784 }
 0x89d   : > { %v1377_v51 = vadd.f32 1.0, %v1785_v50 }
 0x89f   : > { %v1378_v52 = vmul.f32 %v1377_v51, %v1370_v10 }
 0x8a1   : > { %v1379_v53 = vpack.c.bf16 %v1378_v52, %v1378_v52 }
 0x8a3   : > { %1718 = vmatmul.mubr.msk.bf16.vlgmr.msra.gmra.mrb[32].mxu1 %vm1399_vm4, %v1379_v53 }
 0x976   : > { %v1437_v57 = vpop.f32.mrb[32].mxu1 }
 0x977   : > { %v1438_v58 = vadd.f32 %v1547_v56, %v1437_v57  ;;  %v1719_v59 = vpop.f32.mrb[33].mxu1 }
 0x978   : > { %v1440_v60 = vpop.f32.mrb[34].mxu1 }
 0x979   : > { %v1443_v61 = vadd.f32 %v1438_v58, %v2167_v4  ;;  %v1720_v62 = vpop.f32.mrb[35].mxu1 }
 0x97b   : > { %1444 = vst.msk [vmem:[%s404_s29] sm:$0xff] %vm413_vm0, %v1443_v61 }
 0x97c   : > { %1799 = shalt.err (!%p1796_p3)
}
 0x97d   : > { %s1800_s18 = scalar_lea.hbm %s2232_s17, 128  ;;  %s1804_s16 = scalar_lea.hbm %s2287_s12, 256 }
 0x97e   : > { %p1801_p4 = scmp.ne.s32.totalorder %s2232_s17, %s1800_s18  ;;  %p1805_p9 = scmp.lt.u32.totalorder %s2232_s17, %s2287_s12 }
 0x97f   : > { %p1806_p10 = scmp.lt.u32.totalorder %s1804_s16, %s1800_s18  ;;  %p1808_p12 = scmp.lt.u32.totalorder %s1800_s18, %s2232_s17 }
 0x980   : > { %p1802_p7 = pnand %p1801_p4, %p1958_p5 }
 0x981   : > { %p1807_p11 = por %p1806_p10, %p1805_p9 }
 0x982   : > { %p1803_p8 = pneg %p1802_p7 }
 0x983   : > { %p1809_p13 = por %p1808_p12, %p1807_p11 }
 0x985   : > { %p1810_p0 = pnand %p1809_p13, %p1803_p8 }
 0x987   : > { %1813 = shalt.err (!%p1810_p0)
}
 0x988   : > { %1721 = dma.vmem_to_hbm [thread:$0]  (%p1958_p5), %s2234_s15, 128, %s2232_s17, %s1446_s25  }
 0x989 PF: > { %p1727_p1 = scmp.ge.s32.totalorder %s1848_s24, 2  ;;  %s1471_s1 = sand.u32 1, %s1836_s21  }
 0x98a   : > { %s1472_s19 = scalar_lea.sflag [#allocation3], %s1471_s1 }
 0x98b   : > { %p1724_p2 = pnand %p1727_p1, %p1962_p6 }
 0x98d   : > { %1831 = dma.done.wait (!%p1724_p2), %s1472_s19, 128  }
 0x98e   : > { %1833 = vsyncadd (!%p1724_p2), %s1472_s19, 4294967168  ;;  %p22_p3 = scmp.ge.s32.totalorder %s1945_s27, 4   ;;  %s2294_s21 = smov %s1840_s22 }
 0x98f   : > { %s2295_s22 = smov %s1844_s23  ;;  %s2296_s23 = smov %s1956_s30 }
 0x990   : > { %s2297_s24 = smov %s1945_s27  ;;  %24 = sbr.rel (!%p22_p3) target bundleno = 6 (0x6), region = 103 }
 0x997   :  { %1477 = vsyncpa [#allocation3], 1 }
 0x998   :  { %1479 = vsyncpa [#allocation3 + $0x1], 1 }

</bundles_post_ra>
